<compile_context>
chip_gen: v6e
topology: v6e:2x2x1
jax: 0.10.0
libtpu: 0.0.40
codegen_flags: <defaults>
</compile_context>

<pallas_src>
import functools
import math

import jax
import jax.numpy as jnp
from jax import lax
from jax.experimental import pallas as pl
from jax.experimental.pallas import tpu as pltpu


def _round_up(a, b):
    return ((a + b - 1) // b) * b


# ----------------------------------------------------------------------------
# Kernel 1: fused Q/K/V projection — one wide MXU matmul per row tile.
# ----------------------------------------------------------------------------
def _qkv_proj_kernel(x_ref, w_ref, q_ref, k_ref, v_ref, *, d_head):
    # x: (block_p, d_model) bf16 ; w: (d_model, 3*d_head) bf16 (Wq pre-scaled).
    acc = jnp.dot(x_ref[0], w_ref[...], preferred_element_type=jnp.float32)
    q_ref[0] = acc[:, :d_head].astype(q_ref.dtype)
    k_ref[0] = acc[:, d_head:2 * d_head].astype(k_ref.dtype)
    v_ref[0] = acc[:, 2 * d_head:3 * d_head].astype(v_ref.dtype)


# ----------------------------------------------------------------------------
# Kernel 2: causal flash attention, K/V resident in VMEM, in-kernel kv loop.
# ----------------------------------------------------------------------------
def _attn_kernel(q_ref, k_ref, v_ref, o_ref, m_sc, l_sc, acc_sc, *, block):
    qi = pl.program_id(1)
    q = q_ref[0]                                    # (block, d_head) bf16, pre-scaled

    m_sc[...] = jnp.full(m_sc.shape, -jnp.inf, dtype=m_sc.dtype)
    l_sc[...] = jnp.zeros(l_sc.shape, dtype=l_sc.dtype)
    acc_sc[...] = jnp.zeros(acc_sc.shape, dtype=acc_sc.dtype)

    def _one_block(j, *, masked):
        start = pl.multiple_of(j * block, block)
        k = k_ref[0, pl.ds(start, block), :]        # (block, d_head)
        v = v_ref[0, pl.ds(start, block), :]
        # q @ k^T on the MXU, f32 accumulation (scale already folded into q).
        s = lax.dot_general(q, k, (((1,), (1,)), ((), ())),
                            preferred_element_type=jnp.float32)
        if masked:
            # Only the diagonal kv block needs the causal mask (block_q == block_k).
            row = qi * block + lax.broadcasted_iota(jnp.int32, s.shape, 0)
            col = start + lax.broadcasted_iota(jnp.int32, s.shape, 1)
            s = jnp.where(col > row, -jnp.inf, s)
        m_prev = m_sc[...]
        m_new = jnp.maximum(m_prev, s.max(axis=-1, keepdims=True))
        # NaN-safe: the first processed block always contains col=0 <= row, so
        # m_new is finite before alpha is ever evaluated with m_prev = -inf.
        alpha = jnp.exp(m_prev - m_new)
        p = jnp.exp(s - m_new)
        l_sc[...] = alpha * l_sc[...] + p.sum(axis=-1, keepdims=True)
        acc_sc[...] = alpha * acc_sc[...] + jnp.dot(
            p.astype(v.dtype), v, preferred_element_type=jnp.float32)
        m_sc[...] = m_new

    # Unmasked kv blocks strictly below the diagonal block.
    def _body(j, carry):
        _one_block(j, masked=False)
        return carry

    lax.fori_loop(0, qi, _body, 0)
    # Diagonal kv block — the only one needing the causal mask.
    _one_block(qi, masked=True)

    o_ref[0] = (acc_sc[...] *
                pl.reciprocal(l_sc[...], approx=True)).astype(o_ref.dtype)


# ----------------------------------------------------------------------------
# Wrapper
# ----------------------------------------------------------------------------
def masked_attention(x, wq, wk, wv, *, block=256, compute_dtype=jnp.bfloat16):
    """x: (B, S, d_model); wq/wk/wv: (d_model, d_head). Returns (B, S, d_head)."""
    B, S, d_model = x.shape
    d_head = wq.shape[-1]
    out_dtype = x.dtype
    scale = 1.0 / math.sqrt(d_head)

    # 16-aligned tiles (bf16 packs two rows per sublane); pad S to a multiple.
    block = min(block, _round_up(S, 16))
    s_pad = _round_up(S, block)
    if s_pad != S:
        # Padded key rows are causally masked for all real queries; padded
        # query rows are sliced off below.
        x = jnp.pad(x, ((0, 0), (0, s_pad - S), (0, 0)))

    # Fused QKV weight; fold the 1/sqrt(d_head) scale into Wq (free, done once).
    w_fused = jnp.concatenate(
        [wq * scale, wk, wv], axis=1).astype(compute_dtype)       # (d_model, 3*d_head)
    xc = x.astype(compute_dtype)

    itemsize = jnp.dtype(compute_dtype).itemsize
    out_itemsize = jnp.dtype(out_dtype).itemsize

    def _vmem_limit(nbytes):
        return int(min(max(nbytes + (8 << 20), 16 << 20), 64 << 20))

    # --- kernel 1: fused Q/K/V projection -----------------------------------
    block_p = block
    for mult in (8, 4, 2):                          # 512-1024 rows/step when possible
        cand = block * mult
        if cand <= 1024 and s_pad % cand == 0:
            block_p = cand
            break
    n_p = s_pad // block_p
    proj_vmem = (2 * block_p * d_model * itemsize          # x (double-buffered)
                 + 2 * d_model * 3 * d_head * itemsize     # fused weight
                 + 2 * 3 * block_p * d_head * itemsize)    # q/k/v outputs
    proj_cost = pl.CostEstimate(
        flops=2 * B * s_pad * d_model * 3 * d_head,
        transcendentals=0,
        bytes_accessed=itemsize * (B * s_pad * d_model + d_model * 3 * d_head
                                   + 3 * B * s_pad * d_head))
    qkv_shape = jax.ShapeDtypeStruct((B, s_pad, d_head), compute_dtype)
    q, k, v = pl.pallas_call(
        functools.partial(_qkv_proj_kernel, d_head=d_head),
        out_shape=(qkv_shape, qkv_shape, qkv_shape),
        grid_spec=pltpu.PrefetchScalarGridSpec(
            num_scalar_prefetch=0,
            grid=(B, n_p),
            in_specs=[
                pl.BlockSpec((1, block_p, d_model), lambda b, i: (b, i, 0)),
                pl.BlockSpec((d_model, 3 * d_head), lambda b, i: (0, 0)),
            ],
            out_specs=[
                pl.BlockSpec((1, block_p, d_head), lambda b, i: (b, i, 0)),
                pl.BlockSpec((1, block_p, d_head), lambda b, i: (b, i, 0)),
                pl.BlockSpec((1, block_p, d_head), lambda b, i: (b, i, 0)),
            ],
        ),
        compiler_params=pltpu.CompilerParams(
            dimension_semantics=("parallel", "parallel"),
            vmem_limit_bytes=_vmem_limit(proj_vmem)),
        cost_estimate=proj_cost,
    )(xc, w_fused)

    # --- kernel 2: causal flash attention, K/V resident per batch -----------
    # TODO(synk): for very long sequences where 2 * s_pad * d_head * 2B * 2bufs
    # exceeds the VMEM budget (notably v7x, 64 MiB), fall back to a streamed
    # kv grid axis; not needed for the shapes exercised here.
    n_q = s_pad // block
    attn_vmem = (2 * block * d_head * itemsize              # q (double-buffered)
                 + 2 * block * d_head * out_itemsize        # out
                 + 2 * 2 * s_pad * d_head * itemsize        # resident K and V
                 + (block * d_head + 2 * block) * 4)        # f32 scratch
    attn_cost = pl.CostEstimate(
        flops=int(2 * B * d_head * s_pad * (s_pad + block)),   # causal ~half
        transcendentals=int(B * s_pad * (s_pad + block) / 2),
        bytes_accessed=(itemsize * 3 * B * s_pad * d_head
                        + out_itemsize * B * s_pad * d_head))
    out = pl.pallas_call(
        functools.partial(_attn_kernel, block=block),
        out_shape=jax.ShapeDtypeStruct((B, s_pad, d_head), out_dtype),
        grid_spec=pltpu.PrefetchScalarGridSpec(
            num_scalar_prefetch=0,
            grid=(B, n_q),
            in_specs=[
                pl.BlockSpec((1, block, d_head), lambda b, i: (b, i, 0)),
                pl.BlockSpec((1, s_pad, d_head), lambda b, i: (b, 0, 0)),
                pl.BlockSpec((1, s_pad, d_head), lambda b, i: (b, 0, 0)),
            ],
            out_specs=pl.BlockSpec((1, block, d_head), lambda b, i: (b, i, 0)),
            scratch_shapes=[
                pltpu.VMEM((block, 1), jnp.float32),        # running max m
                pltpu.VMEM((block, 1), jnp.float32),        # running denom l
                pltpu.VMEM((block, d_head), jnp.float32),   # output accumulator
            ],
        ),
        compiler_params=pltpu.CompilerParams(
            dimension_semantics=("parallel", "parallel"),
            vmem_limit_bytes=_vmem_limit(attn_vmem)),
        cost_estimate=attn_cost,
    )(q, k, v)

    return out[:, :S, :]


if __name__ == "__main__":
    # Small shapes consistent with the module.  S == d_head so the module's
    # (d_head, d_head) mask coincides with the (S, S) causal mask it intends.
    B, S, d_model, d_head = 2, 8, 32, 8

    key = jax.random.PRNGKey(0)
    kx, kwq, kwk, kwv = jax.random.split(key, 4)
    x = jax.random.normal(kx, (B, S, d_model), dtype=jnp.float32)
    wq = jax.random.normal(kwq, (d_model, d_head), dtype=jnp.float32) / math.sqrt(d_model)
    wk = jax.random.normal(kwk, (d_model, d_head), dtype=jnp.float32) / math.sqrt(d_model)
    wv = jax.random.normal(kwv, (d_model, d_head), dtype=jnp.float32) / math.sqrt(d_model)

    out = masked_attention(x, wq, wk, wv)
    jax.block_until_ready(out)

    # Plain-JAX f32 reference implementing the module's intended forward.
    q_r = x @ wq
    k_r = x @ wk
    v_r = x @ wv
    s_r = jnp.einsum("bqd,bkd->bqk", q_r, k_r) / math.sqrt(d_head)
    causal = jnp.triu(jnp.ones((S, S), dtype=bool), k=1)
    s_r = jnp.where(causal[None, :, :], -jnp.inf, s_r)
    ref = jnp.einsum("bqk,bkd->bqd", jax.nn.softmax(s_r, axis=-1), v_r)

    assert out.shape == (B, S, d_head), out.shape
    err = float(jnp.max(jnp.abs(out - ref)))
    # bf16 MXU inputs with f32 accumulation -> loosened tolerance vs f32 reference.
    assert jnp.allclose(out, ref, atol=3e-2, rtol=3e-2), \
        f"mismatch vs reference (max abs err {err})"
    print("KERNEL_OK")
</pallas_src>

<mosaic_0001>
module attributes {stable_mosaic.version = 11 : i64} {
  func.func @_qkv_proj_kernel(%arg0: i32, %arg1: i32, %arg2: memref<1x16x32xbf16, #tpu.memory_space<vmem>>, %arg3: memref<32x24xbf16, #tpu.memory_space<vmem>>, %arg4: memref<1x16x8xbf16, #tpu.memory_space<vmem>>, %arg5: memref<1x16x8xbf16, #tpu.memory_space<vmem>>, %arg6: memref<1x16x8xbf16, #tpu.memory_space<vmem>>) attributes {dimension_semantics = [#tpu.dimension_semantics<parallel>, #tpu.dimension_semantics<parallel>], iteration_bounds = array<i64: 2, 1>, scalar_prefetch = 0 : i64, scratch_operands = 0 : i64, tpu.core_type = #tpu.core_type<tc>, window_params = [{transform_indices = @transform_0, window_bounds = array<i64: 1, 16, 32>}, {pipeline_mode = #tpu.pipeline_mode<synchronous>, transform_indices = @transform_1, window_bounds = array<i64: 32, 24>}, {transform_indices = @transform_2, window_bounds = array<i64: 1, 16, 8>}, {transform_indices = @transform_3, window_bounds = array<i64: 1, 16, 8>}, {transform_indices = @transform_4, window_bounds = array<i64: 1, 16, 8>}]} {
    %c0 = arith.constant 0 : index
    %c0_0 = arith.constant 0 : index
    %c0_1 = arith.constant 0 : index
    %0 = vector.load %arg2[%c0, %c0_0, %c0_1] : memref<1x16x32xbf16, #tpu.memory_space<vmem>>, vector<1x16x32xbf16>
    %1 = vector.shape_cast %0 : vector<1x16x32xbf16> to vector<16x32xbf16>
    %c0_2 = arith.constant 0 : index
    %c0_3 = arith.constant 0 : index
    %2 = vector.load %arg3[%c0_2, %c0_3] : memref<32x24xbf16, #tpu.memory_space<vmem>>, vector<32x24xbf16>
    %cst = arith.constant dense<0.000000e+00> : vector<16x24xf32>
    %3 = tpu.matmul %1, %2, %cst {dimension_numbers = #tpu.dot_dimension_numbers<[1], [0], [0], [1], [0, 0, 1, 1], [], []>} : vector<16x32xbf16>, vector<32x24xbf16>, vector<16x24xf32> -> vector<16x24xf32>
    %4 = vector.extract_strided_slice %3 {offsets = [0, 0], sizes = [16, 8], strides = [1, 1]} : vector<16x24xf32> to vector<16x8xf32>
    %5 = arith.truncf %4 : vector<16x8xf32> to vector<16x8xbf16>
    %c0_4 = arith.constant 0 : index
    %c0_5 = arith.constant 0 : index
    %c0_6 = arith.constant 0 : index
    %6 = vector.load %arg4[%c0_4, %c0_5, %c0_6] : memref<1x16x8xbf16, #tpu.memory_space<vmem>>, vector<1x16x8xbf16>
    %7 = vector.shape_cast %6 : vector<1x16x8xbf16> to vector<16x8xbf16>
    %8 = vector.shape_cast %5 : vector<16x8xbf16> to vector<1x16x8xbf16>
    tpu.vector_store %arg4[%c0_4, %c0_5, %c0_6], %8 {strides = array<i32>} : memref<1x16x8xbf16, #tpu.memory_space<vmem>>, vector<1x16x8xbf16>,
    %9 = vector.extract_strided_slice %3 {offsets = [0, 8], sizes = [16, 8], strides = [1, 1]} : vector<16x24xf32> to vector<16x8xf32>
    %10 = arith.truncf %9 : vector<16x8xf32> to vector<16x8xbf16>
    %c0_7 = arith.constant 0 : index
    %c0_8 = arith.constant 0 : index
    %c0_9 = arith.constant 0 : index
    %11 = vector.load %arg5[%c0_7, %c0_8, %c0_9] : memref<1x16x8xbf16, #tpu.memory_space<vmem>>, vector<1x16x8xbf16>
    %12 = vector.shape_cast %11 : vector<1x16x8xbf16> to vector<16x8xbf16>
    %13 = vector.shape_cast %10 : vector<16x8xbf16> to vector<1x16x8xbf16>
    tpu.vector_store %arg5[%c0_7, %c0_8, %c0_9], %13 {strides = array<i32>} : memref<1x16x8xbf16, #tpu.memory_space<vmem>>, vector<1x16x8xbf16>,
    %14 = vector.extract_strided_slice %3 {offsets = [0, 16], sizes = [16, 8], strides = [1, 1]} : vector<16x24xf32> to vector<16x8xf32>
    %15 = arith.truncf %14 : vector<16x8xf32> to vector<16x8xbf16>
    %c0_10 = arith.constant 0 : index
    %c0_11 = arith.constant 0 : index
    %c0_12 = arith.constant 0 : index
    %16 = vector.load %arg6[%c0_10, %c0_11, %c0_12] : memref<1x16x8xbf16, #tpu.memory_space<vmem>>, vector<1x16x8xbf16>
    %17 = vector.shape_cast %16 : vector<1x16x8xbf16> to vector<16x8xbf16>
    %18 = vector.shape_cast %15 : vector<16x8xbf16> to vector<1x16x8xbf16>
    tpu.vector_store %arg6[%c0_10, %c0_11, %c0_12], %18 {strides = array<i32>} : memref<1x16x8xbf16, #tpu.memory_space<vmem>>, vector<1x16x8xbf16>,
    return
  }
  func.func @transform_0(%arg0: i32, %arg1: i32) -> (i32, i32, i32) {
    %c0_i32 = arith.constant 0 : i32
    %c0_i32_0 = arith.constant 0 : i32
    return %arg0, %arg1, %c0_i32 : i32, i32, i32
  }
  func.func @transform_1(%arg0: i32, %arg1: i32) -> (i32, i32) {
    %c0_i32 = arith.constant 0 : i32
    %c0_i32_0 = arith.constant 0 : i32
    %c0_i32_1 = arith.constant 0 : i32
    return %c0_i32, %c0_i32_0 : i32, i32
  }
  func.func @transform_2(%arg0: i32, %arg1: i32) -> (i32, i32, i32) {
    %c0_i32 = arith.constant 0 : i32
    %c0_i32_0 = arith.constant 0 : i32
    return %arg0, %arg1, %c0_i32 : i32, i32, i32
  }
  func.func @transform_3(%arg0: i32, %arg1: i32) -> (i32, i32, i32) {
    %c0_i32 = arith.constant 0 : i32
    %c0_i32_0 = arith.constant 0 : i32
    return %arg0, %arg1, %c0_i32 : i32, i32, i32
  }
  func.func @transform_4(%arg0: i32, %arg1: i32) -> (i32, i32, i32) {
    %c0_i32 = arith.constant 0 : i32
    %c0_i32_0 = arith.constant 0 : i32
    return %arg0, %arg1, %c0_i32 : i32, i32, i32
  }
}

</mosaic_0001>

<bundles_post_ra>
// kernel: tpu_custom_call.1
= control target key start
LH: loop header
LB: loop body
LE: loop exit
PB: predicated region body
PF: predicated region fallthrough
CT: control target
= control target key end

     0   :  { %s689_s15 = smov 0   ;;  %s691_s16 = smov 0   ;;  %s740_s0 = inlined_call_operand.vmem [shape: bf16[2,16,32], index: 0, kind: input, shape index: {}]   ;;  %s741_s1 = inlined_call_operand.vmem [shape: bf16[32,24], index: 1, kind: input, shape index: {}]   ;;  %s742_s2 = inlined_call_operand.vmem [shape: bf16[2,16,8], index: 2, kind: output, shape index: {0}]   ;;  %s743_s3 = inlined_call_operand.vmem [shape: bf16[2,16,8], index: 3, kind: output, shape index: {1}]   ;;  %s744_s4 = inlined_call_operand.vmem [shape: bf16[2,16,8], index: 4, kind: output, shape index: {2}]  }
   0x1   :  { %s693_s17 = smov 0  }
   0x2 LB: > { %s27_s18 = sadd.s32 1, %s654_s16  ;;  %p571_p0 = scmp.ge.s32.totalorder %s658_s17, 1  ;;  %s658_s17 = sphi %s693_s17, %s15_s17   ;;  %s654_s16 = sphi %s691_s16, %s746_s16   ;;  %s650_s15 = sphi %s689_s15, %s745_s15  }
   0x3   : > { %p29_p1 = scmp.ge.s32.totalorder %s27_s18, 2  ;;  %p192_p2 = scmp.lt.s32.totalorder %s658_s17, 3 }
   0x5   : > { %s748_s18 = smov (%p29_p1, %s27_s18), 0  ;;  %p193_p3 = pnand %p571_p0, %p192_p2 }
   0x6   : > { %p245_p4 = scmp.lt.s32.totalorder (!%p193_p3), %s650_s15, 1  ;;  %s662_s30 = smov (!%p193_p3), 112  }
   0x7   : > { %196 = sbr.rel (%p193_p3) target bundleno = 336 (0x150), region = 28  ;;  %s663_s5 = smov (!%p193_p3), 120  }
   0xc   : > { %v633_v0 = vld [vmem:[%s741_s1 + $0x8] sm:$0xff]   ;;  %v660_v1 = vmov 0.0   ;;  %v634_v2 = vld [vmem:[%s741_s1] sm:$0xff]   ;;  %vm661_vm0 = vmmov 0   ;;  %s750_s15 = smov (!%p245_p4, %s650_s15), 1  ;;  %vm308_vm1 = vcmask 261120  }
   0xd   : > { %597 = vmatprep.subr.bf16.mxu0 %v660_v1  ;;  %601 = vmatprep.mubr.msk.bf16.mxu0 %vm661_vm0, %v660_v1  ;;  %s588_s23 = sshll.u32 %s750_s15, 3  ;;  %vm361_vm2 = vcmask 60416  }
   0xe   : > { %598 = vmatpush3.bf16.msra.mxu0 %v633_v0  ;;  %s252_s26 = scalar_lea.vmem %s740_s0, %s588_s23  ;;  %s262_s29 = scalar_lea.vmem %s742_s2, %s588_s23 }
   0xf   : > { %599 = vmatprep.subr.bf16.mxu0 %v660_v1  ;;  %v635_v3 = vld [vmem:[%s252_s26] sm:$0xff]   ;;  %s282_s8 = scalar_lea.vmem %s744_s4, %s588_s23  ;;  %s272_s11 = scalar_lea.vmem %s743_s3, %s588_s23 }
  0x12   : > { %600 = vmatpush3.bf16.msra.mxu0 %v634_v2 }
  0x15   : > { %602 = vmatmul.mubr.msk.bf16.vlgmr.msra.gmra.mxu0 %vm308_vm1, %v635_v3 }
  0xd5   : > { %v346_v4 = vpop.f32.mrf.mxu0 }
  0xd6   : > { %v592_v5 = vpack.c.bf16 %v346_v4, %v346_v4 }
  0xd7   : > { %v603_v6 = vpop.f32.mrf.mxu0 }
  0xd8   : > { %362 = vst.msk [vmem:[%s262_s29] sm:$0xf] %vm361_vm2, %v592_v5  ;;  %372 = vrot.lane.b32.xlu1 %v592_v5, %s662_s30  ;;  %364 = vrot.lane.b32.xlu0 %v592_v5, %s663_s5 }
  0xd9   : > { %v349_v7 = vpop.f32.mrf.mxu0 }
  0xda   : > { %v593_v8 = vpack.c.bf16 %v349_v7, %v349_v7 }
  0xdb   : > { %v604_v9 = vpop.f32.mrf.mxu0 }
  0xdc   : > { %363 = vst.msk [vmem:[%s262_s29 + $0x4] sm:$0xf] %vm361_vm2, %v593_v8  ;;  %374 = vrot.lane.b32.xlu1 %v593_v8, %s662_s30  ;;  %366 = vrot.lane.b32.xlu0 %v593_v8, %s663_s5 }
 0x14a   : > { %v373_v10 = vpop.permute.xlu1 %372  ;;  %v365_v11 = vpop.permute.xlu0 %364 }
 0x14b   : > { %378 = vst.msk [vmem:[%s282_s8] sm:$0xf] %vm361_vm2, %v373_v10  ;;  %370 = vst.msk [vmem:[%s272_s11] sm:$0xf] %vm361_vm2, %v365_v11 }
 0x14e   : > { %v375_v12 = vpop.permute.xlu1 %374  ;;  %v367_v13 = vpop.permute.xlu0 %366 }
 0x14f   : > { %379 = vst.msk [vmem:[%s282_s8 + $0x4] sm:$0xf] %vm361_vm2, %v375_v12  ;;  %371 = vst.msk [vmem:[%s272_s11 + $0x4] sm:$0xf] %vm361_vm2, %v367_v13 }
 0x150 PF: > { %s15_s17 = sadd.s32 1, %s658_s17   ;;  %s745_s15 = smov %s654_s16 }
 0x151   : > { %p12_p5 = scmp.ge.s32.totalorder %s15_s17, 4   ;;  %s746_s16 = smov %s748_s18 }
 0x153   :  { %14 = sbr.rel (!%p12_p5) target bundleno = 2 (0x2), region = 82 }

</bundles_post_ra>
